<compile_context>
chip_gen: v7x
topology: tpu7x:2x2x1
jax: 0.10.0
libtpu: 0.0.40
codegen_flags: <defaults>
</compile_context>

<pallas_src>
import functools

import jax
import jax.numpy as jnp
from jax import lax
from jax.experimental import pallas as pl
from jax.experimental.pallas import tpu as pltpu

LN_EPS = 1e-5


# ----------------------------------------------------------------------------
# Kernels
# ----------------------------------------------------------------------------
def _ffn_kernel_resident(x_ref, w1_ref, b1_ref, w2_ref, b2_ref, g_ref,
                         beta_ref, o_ref):
    """nk == 1: whole weights resident in VMEM, no accumulator scratch."""
    x = x_ref[...]
    # First pointwise conv: (tm, d_in) @ (d_in, d_hid), f32 accumulation.
    h = jnp.dot(x, w1_ref[...], preferred_element_type=jnp.float32)
    h = jnp.maximum(h + b1_ref[...].astype(jnp.float32), 0.0)
    # Second pointwise conv straight into the epilogue (no VMEM round-trip).
    y = jnp.dot(h.astype(w2_ref.dtype), w2_ref[...],
                preferred_element_type=jnp.float32)
    z = y + b2_ref[...].astype(jnp.float32) + x.astype(jnp.float32)
    mean = jnp.mean(z, axis=-1, keepdims=True)
    var = jnp.mean(jnp.square(z - mean), axis=-1, keepdims=True)
    zn = (z - mean) * lax.rsqrt(var + LN_EPS)
    o_ref[...] = (zn * g_ref[...].astype(jnp.float32)
                  + beta_ref[...].astype(jnp.float32)).astype(o_ref.dtype)


def _ffn_kernel_tiled(x_ref, w1_ref, b1_ref, w2_ref, b2_ref, g_ref, beta_ref,
                      o_ref, acc_ref):
    """nk > 1: hidden dimension tiled on grid axis 1, f32 accumulator scratch."""
    k = pl.program_id(1)

    @pl.when(k == 0)
    def _():
        acc_ref[...] = jnp.zeros_like(acc_ref)

    x = x_ref[...]
    h = jnp.dot(x, w1_ref[...], preferred_element_type=jnp.float32)
    h = jnp.maximum(h + b1_ref[...].astype(jnp.float32), 0.0)
    acc_ref[...] += jnp.dot(h.astype(w2_ref.dtype), w2_ref[...],
                            preferred_element_type=jnp.float32)

    @pl.when(k == pl.num_programs(1) - 1)
    def _():
        z = (acc_ref[...] + b2_ref[...].astype(jnp.float32)
             + x_ref[...].astype(jnp.float32))
        mean = jnp.mean(z, axis=-1, keepdims=True)
        var = jnp.mean(jnp.square(z - mean), axis=-1, keepdims=True)
        zn = (z - mean) * lax.rsqrt(var + LN_EPS)
        o_ref[...] = (zn * g_ref[...].astype(jnp.float32)
                      + beta_ref[...].astype(jnp.float32)).astype(o_ref.dtype)


# ----------------------------------------------------------------------------
# Planning helpers
# ----------------------------------------------------------------------------
def _round_up(n, m):
    return ((n + m - 1) // m) * m


def _cdiv(a, b):
    return -(-a // b)


def _physical_vmem_bytes():
    try:
        return int(pltpu.get_tpu_info().vmem_capacity_bytes)
    except Exception:
        return 64 << 20  # conservative fallback (v7x-class: 64 MiB per core)


def _plan_tiles(M, d_in, d_hid, d_out, x_itemsize, w_itemsize, sub,
                tm_override, tk_override, force_stream):
    vmem_phys = _physical_vmem_bytes()
    if vmem_phys >= (100 << 20):            # v5e / v6e: 128 MiB VMEM
        budget = 80 << 20
        vmem_limit = 96 << 20
        tm_res_pref, tm_stream_pref = 512, 768
    else:                                    # v7x class: 64 MiB VMEM per core
        budget = 40 << 20
        vmem_limit = 48 << 20
        tm_res_pref, tm_stream_pref = 384, 512

    param_bytes = (d_hid + 3 * d_out) * w_itemsize
    w_bytes = (d_in * d_hid + d_hid * d_out) * w_itemsize

    def row_tiling(tm_pref):
        # Balanced row tile: padding waste is at most one sublane group, and
        # keep >= 2 row tiles when possible so the "parallel" axis can split
        # across two TensorCores (v7x megacore).
        nm = max(1, _cdiv(M, max(sub, tm_pref)))
        if nm == 1 and M >= 2 * sub:
            nm = 2
        tm_eff = _round_up(_cdiv(M, nm), sub)
        nm = _cdiv(M, tm_eff)
        return tm_eff, nm, nm * tm_eff

    # --- resident-weight path: W1/W2 DMA'd from HBM exactly once -----------
    if not force_stream:
        per_row = (2 * d_in * x_itemsize + 2 * d_out * x_itemsize  # x/out dbuf
                   + 4 * d_hid + 8 * d_out)                        # f32 h, z
        head = budget - w_bytes - param_bytes - (2 << 20)
        tm_cap = head // per_row if head > 0 else 0
        if tm_cap >= sub:
            tm_pref = tm_override if tm_override else tm_res_pref
            tm_pref = min(tm_pref, int(tm_cap))
            tm_eff, nm, M_pad = row_tiling(tm_pref)
            return dict(resident=True, tm=tm_eff, nm=nm, M_pad=M_pad,
                        tk=d_hid, nk=1, d_hid_p=d_hid,
                        vmem_limit=vmem_limit, nbuf_w=1)

    # --- streamed-weight path: hidden dim tiled on an "arbitrary" axis -----
    nbuf_w = 3
    tm_pref = tm_override if tm_override else tm_stream_pref
    tm_eff, nm, M_pad = row_tiling(tm_pref)
    while True:
        fixed = (2 * tm_eff * d_in * x_itemsize
                 + 2 * tm_eff * d_out * x_itemsize
                 + 4 * tm_eff * d_out + param_bytes + (2 << 20))
        head = budget - fixed
        per_tk = nbuf_w * (d_in + d_out) * w_itemsize + 4 * tm_eff
        tk_cap = head // per_tk if head > 0 else 0
        if tk_cap >= 128 or tm_eff <= sub:
            break
        tm_eff, nm, M_pad = row_tiling(max(sub, tm_eff // 2))

    tk = max(128, (int(tk_cap) // 128) * 128)
    tk = min(tk, _round_up(d_hid, 128))
    if tk_override:
        tk = int(tk_override)
    d_hid_p = _round_up(d_hid, tk)
    nk = d_hid_p // tk
    return dict(resident=False, tm=tm_eff, nm=nm, M_pad=M_pad,
                tk=tk, nk=nk, d_hid_p=d_hid_p,
                vmem_limit=vmem_limit, nbuf_w=(3 if nk > 2 else 2))


# ----------------------------------------------------------------------------
# Wrapper
# ----------------------------------------------------------------------------
@functools.partial(jax.jit, static_argnames=("tm", "tk", "force_stream"))
def positionwise_feed_forward(x, w1, b1, w2, b2, gamma, beta, *,
                              tm=None, tk=None, force_stream=False):
    """x: (B, T, d_in); w1: (d_in, d_hid); w2: (d_hid, d_out=d_in)."""
    B, T, d_in = x.shape
    d_hid = w1.shape[1]
    d_out = w2.shape[1]
    assert d_out == d_in, "simple config: d_out == d_in (residual_repeat=None)"

    M = B * T
    sub = 16 if x.dtype == jnp.bfloat16 else 8           # min sublane tile
    x_itemsize = x.dtype.itemsize
    w_itemsize = w1.dtype.itemsize

    plan = _plan_tiles(M, d_in, d_hid, d_out, x_itemsize, w_itemsize, sub,
                       tm, tk, force_stream)
    tm_eff, nm, M_pad = plan["tm"], plan["nm"], plan["M_pad"]
    tk_eff, nk, d_hid_p = plan["tk"], plan["nk"], plan["d_hid_p"]

    x2d = x.reshape(M, d_in)
    if M_pad != M:
        x2d = jnp.pad(x2d, ((0, M_pad - M), (0, 0)))
    # Zero-padding the hidden dim is exact: padded units have zero W1 columns /
    # b1 entries -> relu(0) = 0 -> zero contribution through W2.
    if d_hid_p != d_hid:
        w1 = jnp.pad(w1, ((0, 0), (0, d_hid_p - d_hid)))
        b1 = jnp.pad(b1, (0, d_hid_p - d_hid))
        w2 = jnp.pad(w2, ((0, d_hid_p - d_hid), (0, 0)))

    # 2-D biases / LN params so they live as lane vectors in VMEM.
    b1_2d = b1.reshape(1, d_hid_p)
    b2_2d = b2.reshape(1, d_out)
    g_2d = gamma.reshape(1, d_out)
    beta_2d = beta.reshape(1, d_out)

    # Cost estimate: account for weight re-streaming when nk > 1 (each row
    # tile refetches every weight slice).
    weight_passes = nm if nk > 1 else 1
    w_stream_bytes = (w1.size * w1.dtype.itemsize
                      + w2.size * w2.dtype.itemsize
                      + b1_2d.size * b1_2d.dtype.itemsize)
    bytes_accessed = (x2d.size * x2d.dtype.itemsize
                      + weight_passes * w_stream_bytes
                      + (b2_2d.size + g_2d.size + beta_2d.size)
                      * b2_2d.dtype.itemsize
                      + M_pad * d_out * x.dtype.itemsize)
    cost = pl.CostEstimate(
        flops=int(2 * M_pad * d_hid_p * (d_in + d_out) + 10 * M_pad * d_out),
        transcendentals=int(M_pad),                     # one rsqrt per row
        bytes_accessed=int(bytes_accessed),
    )

    single = pl.Buffered(1)   # constant-index blocks: one buffer is enough

    if plan["resident"]:
        out2d = pl.pallas_call(
            _ffn_kernel_resident,
            out_shape=jax.ShapeDtypeStruct((M_pad, d_out), x.dtype),
            grid_spec=pltpu.PrefetchScalarGridSpec(
                num_scalar_prefetch=0,
                grid=(nm,),
                in_specs=[
                    pl.BlockSpec((tm_eff, d_in), lambda i: (i, 0)),
                    pl.BlockSpec((d_in, d_hid_p), lambda i: (0, 0),
                                 pipeline_mode=single),
                    pl.BlockSpec((1, d_hid_p), lambda i: (0, 0),
                                 pipeline_mode=single),
                    pl.BlockSpec((d_hid_p, d_out), lambda i: (0, 0),
                                 pipeline_mode=single),
                    pl.BlockSpec((1, d_out), lambda i: (0, 0),
                                 pipeline_mode=single),
                    pl.BlockSpec((1, d_out), lambda i: (0, 0),
                                 pipeline_mode=single),
                    pl.BlockSpec((1, d_out), lambda i: (0, 0),
                                 pipeline_mode=single),
                ],
                out_specs=pl.BlockSpec((tm_eff, d_out), lambda i: (i, 0)),
            ),
            compiler_params=pltpu.CompilerParams(
                dimension_semantics=("parallel",),
                vmem_limit_bytes=int(plan["vmem_limit"]),
            ),
            cost_estimate=cost,
        )(x2d, w1, b1_2d, w2, b2_2d, g_2d, beta_2d)
    else:
        w_stream = pl.Buffered(plan["nbuf_w"])  # deepen the dominant DMA
        out2d = pl.pallas_call(
            _ffn_kernel_tiled,
            out_shape=jax.ShapeDtypeStruct((M_pad, d_out), x.dtype),
            grid_spec=pltpu.PrefetchScalarGridSpec(
                num_scalar_prefetch=0,
                grid=(nm, nk),
                in_specs=[
                    pl.BlockSpec((tm_eff, d_in), lambda i, k: (i, 0)),
                    pl.BlockSpec((d_in, tk_eff), lambda i, k: (0, k),
                                 pipeline_mode=w_stream),
                    pl.BlockSpec((1, tk_eff), lambda i, k: (0, k)),
                    pl.BlockSpec((tk_eff, d_out), lambda i, k: (k, 0),
                                 pipeline_mode=w_stream),
                    pl.BlockSpec((1, d_out), lambda i, k: (0, 0),
                                 pipeline_mode=single),
                    pl.BlockSpec((1, d_out), lambda i, k: (0, 0),
                                 pipeline_mode=single),
                    pl.BlockSpec((1, d_out), lambda i, k: (0, 0),
                                 pipeline_mode=single),
                ],
                out_specs=pl.BlockSpec((tm_eff, d_out), lambda i, k: (i, 0)),
                scratch_shapes=[pltpu.VMEM((tm_eff, d_out), jnp.float32)],
            ),
            compiler_params=pltpu.CompilerParams(
                dimension_semantics=("parallel", "arbitrary"),
                vmem_limit_bytes=int(plan["vmem_limit"]),
            ),
            cost_estimate=cost,
        )(x2d, w1, b1_2d, w2, b2_2d, g_2d, beta_2d)

    return out2d[:M].reshape(B, T, d_out)


# ----------------------------------------------------------------------------
# Reference + demo
# ----------------------------------------------------------------------------
def _reference(x, w1, b1, w2, b2, gamma, beta):
    # Pure-JAX reference of the PyTorch forward (eval mode), in f32.
    x = x.astype(jnp.float32)
    h = jnp.maximum(jnp.einsum("btc,ch->bth", x, w1.astype(jnp.float32)) + b1, 0.0)
    y = jnp.einsum("bth,ho->bto", h, w2.astype(jnp.float32)) + b2
    z = y + x
    mean = jnp.mean(z, axis=-1, keepdims=True)
    var = jnp.mean(jnp.square(z - mean), axis=-1, keepdims=True)
    return (z - mean) / jnp.sqrt(var + LN_EPS) * gamma + beta


if __name__ == "__main__":
    # --- 1) small demo shape: resident-weight path --------------------------
    B, T, d_in, d_hid = 2, 8, 32, 64
    kx, k1, kb1, k2, kb2 = jax.random.split(jax.random.PRNGKey(0), 5)

    x = jax.random.normal(kx, (B, T, d_in), dtype=jnp.float32)
    # Conv1d weight (out, in, 1) pre-transposed to matmul form (in, out).
    w1 = jax.random.normal(k1, (d_in, d_hid), dtype=jnp.float32) * 0.1
    b1 = jax.random.normal(kb1, (d_hid,), dtype=jnp.float32) * 0.1
    w2 = jax.random.normal(k2, (d_hid, d_in), dtype=jnp.float32) * 0.1
    b2 = jax.random.normal(kb2, (d_in,), dtype=jnp.float32) * 0.1
    gamma = jnp.ones((d_in,), dtype=jnp.float32)
    beta = jnp.zeros((d_in,), dtype=jnp.float32)

    out = jax.block_until_ready(
        positionwise_feed_forward(x, w1, b1, w2, b2, gamma, beta))
    ref = _reference(x, w1, b1, w2, b2, gamma, beta)
    assert out.shape == (B, T, d_in)
    assert jnp.allclose(out, ref, atol=1e-4, rtol=1e-4)

    # --- 2) streamed-weight fallback: row padding (B*T not a tile multiple),
    # hidden-dim padding and the "arbitrary" accumulation grid axis ----------
    B2, T2, d_in2, d_hid2 = 3, 50, 128, 320
    kx, k1, kb1, k2, kb2 = jax.random.split(jax.random.PRNGKey(1), 5)
    x2 = jax.random.normal(kx, (B2, T2, d_in2), dtype=jnp.float32)
    w1b = jax.random.normal(k1, (d_in2, d_hid2), dtype=jnp.float32) * 0.05
    b1b = jax.random.normal(kb1, (d_hid2,), dtype=jnp.float32) * 0.05
    w2b = jax.random.normal(k2, (d_hid2, d_in2), dtype=jnp.float32) * 0.05
    b2b = jax.random.normal(kb2, (d_in2,), dtype=jnp.float32) * 0.05
    g2 = jnp.ones((d_in2,), dtype=jnp.float32)
    be2 = jnp.zeros((d_in2,), dtype=jnp.float32)

    out2 = jax.block_until_ready(
        positionwise_feed_forward(x2, w1b, b1b, w2b, b2b, g2, be2,
                                  tm=64, tk=128, force_stream=True))
    ref2 = _reference(x2, w1b, b1b, w2b, b2b, g2, be2)
    assert out2.shape == (B2, T2, d_in2)
    assert jnp.allclose(out2, ref2, atol=1e-3, rtol=1e-3)

    # --- 3) bf16 operands (MXU-native mixed precision, f32 accumulation) ----
    B3, T3, d_in3, d_hid3 = 2, 24, 128, 256
    kx, k1, kb1, k2, kb2 = jax.random.split(jax.random.PRNGKey(2), 5)
    x3 = jax.random.normal(kx, (B3, T3, d_in3), dtype=jnp.float32).astype(jnp.bfloat16)
    w1c = (jax.random.normal(k1, (d_in3, d_hid3), dtype=jnp.float32) * 0.05).astype(jnp.bfloat16)
    b1c = jax.random.normal(kb1, (d_hid3,), dtype=jnp.float32) * 0.05
    w2c = (jax.random.normal(k2, (d_hid3, d_in3), dtype=jnp.float32) * 0.05).astype(jnp.bfloat16)
    b2c = jax.random.normal(kb2, (d_in3,), dtype=jnp.float32) * 0.05
    g3 = jnp.ones((d_in3,), dtype=jnp.float32)
    be3 = jnp.zeros((d_in3,), dtype=jnp.float32)

    out3 = jax.block_until_ready(
        positionwise_feed_forward(x3, w1c, b1c.astype(jnp.bfloat16),
                                  w2c, b2c.astype(jnp.bfloat16),
                                  g3.astype(jnp.bfloat16),
                                  be3.astype(jnp.bfloat16)))
    ref3 = _reference(x3, w1c, b1c, w2c, b2c, g3, be3)
    assert out3.shape == (B3, T3, d_in3)
    assert jnp.allclose(out3.astype(jnp.float32), ref3, atol=1e-1, rtol=1e-1)

    print("KERNEL_OK")
</pallas_src>

<mosaic_0001>
module attributes {stable_mosaic.version = 11 : i64} {
  func.func @_ffn_kernel_resident(%arg0: i32, %arg1: memref<8x32xf32, #tpu.memory_space<vmem>>, %arg2: memref<32x64xf32, #tpu.memory_space<vmem>>, %arg3: memref<1x64xf32, #tpu.memory_space<vmem>>, %arg4: memref<64x32xf32, #tpu.memory_space<vmem>>, %arg5: memref<1x32xf32, #tpu.memory_space<vmem>>, %arg6: memref<1x32xf32, #tpu.memory_space<vmem>>, %arg7: memref<1x32xf32, #tpu.memory_space<vmem>>, %arg8: memref<8x32xf32, #tpu.memory_space<vmem>>) attributes {dimension_semantics = [#tpu.dimension_semantics<parallel>], iteration_bounds = array<i64: 2>, scalar_prefetch = 0 : i64, scratch_operands = 0 : i64, tpu.core_type = #tpu.core_type<tc>, window_params = [{transform_indices = @transform_0, window_bounds = array<i64: 8, 32>}, {pipeline_mode = #tpu.pipeline_mode<synchronous>, transform_indices = @transform_1, window_bounds = array<i64: 32, 64>}, {pipeline_mode = #tpu.pipeline_mode<synchronous>, transform_indices = @transform_2, window_bounds = array<i64: 1, 64>}, {pipeline_mode = #tpu.pipeline_mode<synchronous>, transform_indices = @transform_3, window_bounds = array<i64: 64, 32>}, {pipeline_mode = #tpu.pipeline_mode<synchronous>, transform_indices = @transform_4, window_bounds = array<i64: 1, 32>}, {pipeline_mode = #tpu.pipeline_mode<synchronous>, transform_indices = @transform_5, window_bounds = array<i64: 1, 32>}, {pipeline_mode = #tpu.pipeline_mode<synchronous>, transform_indices = @transform_6, window_bounds = array<i64: 1, 32>}, {transform_indices = @transform_7, window_bounds = array<i64: 8, 32>}]} {
    %c0 = arith.constant 0 : index
    %c0_0 = arith.constant 0 : index
    %0 = vector.load %arg1[%c0, %c0_0] : memref<8x32xf32, #tpu.memory_space<vmem>>, vector<8x32xf32>
    %c0_1 = arith.constant 0 : index
    %c0_2 = arith.constant 0 : index
    %1 = vector.load %arg2[%c0_1, %c0_2] : memref<32x64xf32, #tpu.memory_space<vmem>>, vector<32x64xf32>
    %cst = arith.constant dense<0.000000e+00> : vector<8x64xf32>
    %2 = tpu.matmul %0, %1, %cst {dimension_numbers = #tpu.dot_dimension_numbers<[1], [0], [0], [1], [0, 0, 1, 1], [], []>} : vector<8x32xf32>, vector<32x64xf32>, vector<8x64xf32> -> vector<8x64xf32>
    %c0_3 = arith.constant 0 : index
    %c0_4 = arith.constant 0 : index
    %3 = vector.load %arg3[%c0_3, %c0_4] : memref<1x64xf32, #tpu.memory_space<vmem>>, vector<1x64xf32>
    %4 = vector.broadcast %3 : vector<1x64xf32> to vector<8x64xf32>
    %5 = arith.addf %2, %4 : vector<8x64xf32>
    %cst_5 = arith.constant 0.000000e+00 : f32
    %6 = vector.broadcast %cst_5 : f32 to vector<8x64xf32>
    %7 = arith.maximumf %5, %6 : vector<8x64xf32>
    %c0_6 = arith.constant 0 : index
    %c0_7 = arith.constant 0 : index
    %8 = vector.load %arg4[%c0_6, %c0_7] : memref<64x32xf32, #tpu.memory_space<vmem>>, vector<64x32xf32>
    %cst_8 = arith.constant dense<0.000000e+00> : vector<8x32xf32>
    %9 = tpu.matmul %7, %8, %cst_8 {dimension_numbers = #tpu.dot_dimension_numbers<[1], [0], [0], [1], [0, 0, 1, 1], [], []>} : vector<8x64xf32>, vector<64x32xf32>, vector<8x32xf32> -> vector<8x32xf32>
    %c0_9 = arith.constant 0 : index
    %c0_10 = arith.constant 0 : index
    %10 = vector.load %arg5[%c0_9, %c0_10] : memref<1x32xf32, #tpu.memory_space<vmem>>, vector<1x32xf32>
    %11 = vector.broadcast %10 : vector<1x32xf32> to vector<8x32xf32>
    %12 = arith.addf %9, %11 : vector<8x32xf32>
    %13 = arith.addf %12, %0 : vector<8x32xf32>
    %cst_11 = arith.constant dense<0.000000e+00> : vector<8xf32>
    %14 = vector.multi_reduction <add>, %13, %cst_11 [1] : vector<8x32xf32> to vector<8xf32>
    %15 = vector.shape_cast %14 : vector<8xf32> to vector<8x1xf32>
    %cst_12 = arith.constant 3.200000e+01 : f32
    %16 = vector.broadcast %cst_12 : f32 to vector<8x1xf32>
    %17 = arith.divf %15, %16 : vector<8x1xf32>
    %18 = vector.broadcast %17 : vector<8x1xf32> to vector<8x32xf32>
    %19 = arith.subf %13, %18 : vector<8x32xf32>
    %20 = arith.mulf %19, %19 : vector<8x32xf32>
    %cst_13 = arith.constant dense<0.000000e+00> : vector<8xf32>
    %21 = vector.multi_reduction <add>, %20, %cst_13 [1] : vector<8x32xf32> to vector<8xf32>
    %22 = vector.shape_cast %21 : vector<8xf32> to vector<8x1xf32>
    %cst_14 = arith.constant 3.200000e+01 : f32
    %23 = vector.broadcast %cst_14 : f32 to vector<8x1xf32>
    %24 = arith.divf %22, %23 : vector<8x1xf32>
    %25 = vector.broadcast %17 : vector<8x1xf32> to vector<8x32xf32>
    %26 = arith.subf %13, %25 : vector<8x32xf32>
    %cst_15 = arith.constant 9.99999974E-6 : f32
    %27 = vector.broadcast %cst_15 : f32 to vector<8x1xf32>
    %28 = arith.addf %24, %27 : vector<8x1xf32>
    %29 = math.rsqrt %28 : vector<8x1xf32>
    %30 = vector.broadcast %29 : vector<8x1xf32> to vector<8x32xf32>
    %31 = arith.mulf %26, %30 : vector<8x32xf32>
    %c0_16 = arith.constant 0 : index
    %c0_17 = arith.constant 0 : index
    %32 = vector.load %arg6[%c0_16, %c0_17] : memref<1x32xf32, #tpu.memory_space<vmem>>, vector<1x32xf32>
    %33 = vector.broadcast %32 : vector<1x32xf32> to vector<8x32xf32>
    %34 = arith.mulf %31, %33 : vector<8x32xf32>
    %c0_18 = arith.constant 0 : index
    %c0_19 = arith.constant 0 : index
    %35 = vector.load %arg7[%c0_18, %c0_19] : memref<1x32xf32, #tpu.memory_space<vmem>>, vector<1x32xf32>
    %36 = vector.broadcast %35 : vector<1x32xf32> to vector<8x32xf32>
    %37 = arith.addf %34, %36 : vector<8x32xf32>
    %c0_20 = arith.constant 0 : index
    %c0_21 = arith.constant 0 : index
    %38 = vector.load %arg8[%c0_20, %c0_21] : memref<8x32xf32, #tpu.memory_space<vmem>>, vector<8x32xf32>
    tpu.vector_store %arg8[%c0_20, %c0_21], %37 {strides = array<i32>} : memref<8x32xf32, #tpu.memory_space<vmem>>, vector<8x32xf32>,
    return
  }
  func.func @transform_0(%arg0: i32) -> (i32, i32) {
    %c0_i32 = arith.constant 0 : i32
    %c0_i32_0 = arith.constant 0 : i32
    return %arg0, %c0_i32 : i32, i32
  }
  func.func @transform_1(%arg0: i32) -> (i32, i32) {
    %c0_i32 = arith.constant 0 : i32
    %c0_i32_0 = arith.constant 0 : i32
    %c0_i32_1 = arith.constant 0 : i32
    return %c0_i32, %c0_i32_0 : i32, i32
  }
  func.func @transform_2(%arg0: i32) -> (i32, i32) {
    %c0_i32 = arith.constant 0 : i32
    %c0_i32_0 = arith.constant 0 : i32
    %c0_i32_1 = arith.constant 0 : i32
    return %c0_i32, %c0_i32_0 : i32, i32
  }
  func.func @transform_3(%arg0: i32) -> (i32, i32) {
    %c0_i32 = arith.constant 0 : i32
    %c0_i32_0 = arith.constant 0 : i32
    %c0_i32_1 = arith.constant 0 : i32
    return %c0_i32, %c0_i32_0 : i32, i32
  }
  func.func @transform_4(%arg0: i32) -> (i32, i32) {
    %c0_i32 = arith.constant 0 : i32
    %c0_i32_0 = arith.constant 0 : i32
    %c0_i32_1 = arith.constant 0 : i32
    return %c0_i32, %c0_i32_0 : i32, i32
  }
  func.func @transform_5(%arg0: i32) -> (i32, i32) {
    %c0_i32 = arith.constant 0 : i32
    %c0_i32_0 = arith.constant 0 : i32
    %c0_i32_1 = arith.constant 0 : i32
    return %c0_i32, %c0_i32_0 : i32, i32
  }
  func.func @transform_6(%arg0: i32) -> (i32, i32) {
    %c0_i32 = arith.constant 0 : i32
    %c0_i32_0 = arith.constant 0 : i32
    %c0_i32_1 = arith.constant 0 : i32
    return %c0_i32, %c0_i32_0 : i32, i32
  }
  func.func @transform_7(%arg0: i32) -> (i32, i32) {
    %c0_i32 = arith.constant 0 : i32
    %c0_i32_0 = arith.constant 0 : i32
    return %arg0, %c0_i32 : i32, i32
  }
}

</mosaic_0001>

<bundles_post_ra>
// kernel: positionwise_feed_forward.1
= control target key start
LH: loop header
LB: loop body
LE: loop exit
PB: predicated region body
PF: predicated region fallthrough
CT: control target
= control target key end

     0   :  { %12 = vsyncpa [#allocation3], 0  ;;  %s937_s0 = inlined_call_operand.vmem [shape: f32[16,32], index: 0, kind: input, shape index: {}]   ;;  %s938_s1 = inlined_call_operand.vmem [shape: f32[32,64], index: 1, kind: input, shape index: {}]   ;;  %s939_s2 = inlined_call_operand.vmem [shape: f32[1,64], index: 2, kind: input, shape index: {}]   ;;  %s940_s3 = inlined_call_operand.vmem [shape: f32[64,32], index: 3, kind: input, shape index: {}]   ;;  %s941_s4 = inlined_call_operand.vmem [shape: f32[1,32], index: 4, kind: input, shape index: {}]   ;;  %s942_s5 = inlined_call_operand.vmem [shape: f32[1,32], index: 5, kind: input, shape index: {}]   ;;  %s943_s6 = inlined_call_operand.vmem [shape: f32[1,32], index: 6, kind: input, shape index: {}]   ;;  %s944_s7 = inlined_call_operand.hbm [shape: f32[16,32], index: 7, kind: output, shape index: {}]  }
   0x1   :  { %14 = vsyncpa [#allocation3 + $0x1], 0  ;;  %s785_s24 = smov 0   ;;  %s787_s25 = smov 0  }
   0x2   :  { %s789_s26 = smov 0   ;;  %s791_s27 = smov 0  }
   0x3 LB: > { %s806_s28 = sadd.s32 4294967295, %s739_s27   ;;  %s555_s29 = sadd.s32 4294967294, %s739_s27   ;;  %s739_s27 = sphi %s791_s27, %s950_s27   ;;  %s735_s26 = sphi %s789_s26, %s949_s26   ;;  %s731_s25 = sphi %s787_s25, %s948_s25   ;;  %s727_s24 = sphi %s785_s24, %s947_s24  }
   0x4   : > { %s810_s30 = sadd.s32 1, %s739_s27   ;;  %s179_s8 = sadd.s32 1, %s735_s26 }
   0x5   : > { %s176_s9 = ssub.s32 %s739_s27, %s810_s30  ;;  %p189_p0 = scmp.ne.s32.totalorder %s735_s26, %s731_s25 }
   0x6   : > { %p177_p1 = scmp.eq.s32.totalorder %s176_s9, 0  ;;  %p190_p2 = scmp.eq.s32.totalorder %s806_s28, 1 }
   0x7   : > { %p195_p3 = scmp.ne.s32.totalorder %s731_s25, %s727_s24  ;;  %p196_p4 = scmp.eq.s32.totalorder %s555_s29, 1 }
   0x8   : > { %s821_s10 = scalar_select %p177_p1, %s735_s26, %s179_s8  }
   0x9   : > { %p823_p5 = por %p190_p2, %p189_p0  ;;  %p827_p6 = por %p196_p4, %p195_p3 }
   0xa   : > { %p558_p7 = scmp.ge.s32.totalorder %s739_s27, 1  ;;  %p239_p8 = scmp.lt.s32.totalorder %s739_s27, 3 }
   0xc   : > { %p240_p9 = pnand %p558_p7, %p239_p8 }
   0xd   : > { %v275_v0 = vld [vmem:[%s938_s1] sm:$0xff] (!%p240_p9)  ;;  %v276_v1 = vld [vmem:[%s938_s1 + $0x8] sm:$0xff] (!%p240_p9)  ;;  %v277_v2 = vld [vmem:[%s938_s1 + $0x10] sm:$0xff] (!%p240_p9)  ;;  %v741_v3 = vmov (!%p240_p9), 0.0|0.0   ;;  %vm742_vm0 = vmmov (!%p240_p9), 0   ;;  %v743_v6 = vmov (!%p240_p9), 0.0  }
   0xe   : > { %243 = sbr.rel (%p240_p9) target bundleno = 785 (0x311), region = 48  ;;  %615 = vmatprep.subr.bf16.mxu0 (!%p240_p9), %v741_v3  ;;  %v616_v4 = vpack.c.bf16 (!%p240_p9), %v276_v1, %v275_v0  ;;  %v278_v5 = vld [vmem:[%s938_s1 + $0x18] sm:$0xff] (!%p240_p9)  ;;  %593 = vmatprep.mubr.msk.f32.mxu0 (!%p240_p9), %vm742_vm0, %v743_v6  ;;  %p270_p10 = scmp.lt.s32.totalorder (!%p240_p9), %s806_s28, 1  ;;  %v361_v7 = vld [vmem:[%s940_s3] sm:$0xff] (!%p240_p9)  ;;  %v362_v8 = vld [vmem:[%s940_s3 + $0x8] sm:$0xff] (!%p240_p9)  ;;  %vm286_vm1 = vcmask (!%p240_p9), 261120  }
   0xf   : > { %621 = vmatprep.subr.bf16.mxu1 (!%p240_p9), %v741_v3  ;;  %v622_v9 = vpack.c.bf16 (!%p240_p9), %v362_v8, %v361_v7  ;;  %v363_v10 = vld [vmem:[%s940_s3 + $0x10] sm:$0xff] (!%p240_p9)  ;;  %v364_v11 = vld [vmem:[%s940_s3 + $0x18] sm:$0xff] (!%p240_p9)  ;;  %612 = vmatprep.mubr.msk.f32.mxu1 (!%p240_p9), %vm742_vm0, %v743_v6  ;;  %v619_v12 = vpack.c.bf16 (!%p240_p9), %v278_v5, %v277_v2  ;;  %v365_v14 = vld [vmem:[%s940_s3 + $0x20] sm:$0xff] (!%p240_p9)  ;;  %vm376_vm2 = vcmask (!%p240_p9), 523264   ;;  %s267_s18 = sand.u32 (!%p240_p9), 1, %s731_s25   ;;  %s568_s29 = sshll.u32 (!%p240_p9), %s806_s28, 7 }
  0x10   : > { %617 = vmatpush3.bf16.msra.mxu0 (!%p240_p9), %v616_v4  ;;  %v625_v13 = vpack.c.bf16 (!%p240_p9), %v364_v11, %v363_v10  ;;  %v366_v15 = vld [vmem:[%s940_s3 + $0x28] sm:$0xff] (!%p240_p9)  ;;  %v367_v18 = vld [vmem:[%s940_s3 + $0x30] sm:$0xff] (!%p240_p9)  ;;  %v368_v19 = vld [vmem:[%s940_s3 + $0x38] sm:$0xff] (!%p240_p9)  ;;  %s559_s19 = sshll.u32 (!%p240_p9), %s267_s18, 3 }
  0x11   : > { %618 = vmatprep.subr.bf16.mxu0 (!%p240_p9), %v741_v3  ;;  %623 = vmatpush3.bf16.msra.mxu1 (!%p240_p9), %v622_v9  ;;  %v628_v17 = vpack.c.bf16 (!%p240_p9), %v366_v15, %v365_v14  ;;  %v631_v20 = vpack.c.bf16 (!%p240_p9), %v368_v19, %v367_v18  ;;  %v561_v21 = vld [vmem:[%s939_s2] ss:$0 sm:$0xff] (!%p240_p9)  ;;  %s269_s8 = scalar_lea.vmem (!%p240_p9), [#allocation2], %s559_s19 }
  0x12   : > { %624 = vmatprep.subr.bf16.mxu1 (!%p240_p9), %v741_v3  ;;  %v563_v26 = vld [vmem:[%s941_s4] ss:$0 sm:$0xff] (!%p240_p9)  ;;  %s496_s9 = sshll.u32 (!%p240_p9), %s269_s8, 4  ;;  %s896_s9 = int_to_ptr.vmem [resolvable:$true] %s496_s9 }
  0x13   : > { %v565_v41 = vld [vmem:[%s942_s5] ss:$0 sm:$0xff] (!%p240_p9)  ;;  %s677_s17 = scalar_lea.vmem (!%p240_p9), %s896_s9, 128 }
  0x14   : > { %620 = vmatpush3.bf16.msra.mxu0 (!%p240_p9), %v619_v12  ;;  %v566_v43 = vld [vmem:[%s943_s6] ss:$0 sm:$0xff] (!%p240_p9)  ;;  %p678_p11 = scmp.ne.s32.totalorder (!%p240_p9), %s896_s9, %s677_s17 }
  0x15   : > { %s271_s15 = scalar_select %p270_p10, %s806_s28, 1  ;;  %626 = vmatpush3.bf16.msra.mxu1 %v625_v13 }
  0x16   : > { %627 = vmatprep.subr.bf16.mxu1 %v741_v3  ;;  %p679_p12 = pnand %p678_p11, %p823_p5  ;;  %s744_s28 = smov [#allocation2]  }
  0x17   : > { %s560_s16 = sshll.u32 %s271_s15, 3  ;;  %s894_s15 = scalar_lea.hbm %s944_s7, %s568_s29 }
  0x18   : > { %s273_s23 = scalar_lea.vmem %s937_s0, %s560_s16  ;;  %s483_s16 = scalar_lea.sflag [#allocation3], %s267_s18 }
  0x19   : > { %v274_v16 = vld [vmem:[%s273_s23] sm:$0xff]  ;;  %629 = vmatpush3.bf16.msra.mxu1 %v628_v17  ;;  %p680_p13 = pneg %p679_p12  ;;  %s681_s19 = sshll.u32 %s744_s28, 4  ;;  %s682_s19 = int_to_ptr.vmem [resolvable:$false] %s681_s19 }
  0x1a   : > { %594 = vmatmul.mubr.msk.f32.vlgmr.msra.gmra.mrb[0].mxu0 %vm286_vm1, %v274_v16  ;;  %630 = vmatprep.subr.bf16.mxu1 %v741_v3  ;;  %s683_s20 = scalar_lea.vmem %s682_s19, 256  ;;  %p684_p0 = scmp.lt.s32.totalorder %s896_s9, %s682_s19 }
  0x1b   : > { %p685_p1 = scmp.lt.s32.totalorder %s683_s20, %s677_s17 }
  0x1d   : > { %632 = vmatpush3.bf16.msra.mxu1 %v631_v20  ;;  %p686_p2 = por %p685_p1, %p684_p0 }
  0x1f   : > { %p687_p3 = pnand %p686_p2, %p680_p13 }
  0xed   : > { %v356_v22 = vpop.f32.mrb[0].mxu0 }
  0xee   : > { %v357_v23 = vadd.f32 %v561_v21, %v356_v22  ;;  %v595_v24 = vpop.f32.mrb[1].mxu0 }
  0xf0   : > { %v360_v25 = vmax.f32 %v357_v23, 0.0 }
  0xf2   : > { %613 = vmatmul.mubr.msk.f32.vlgmr.msra.gmra.mrb[0].mxu1 %vm376_vm2, %v360_v25 }
 0x1c5   : > { %v446_v27 = vpop.f32.mrb[0].mxu1 }
 0x1c6   : > { %v447_v28 = vadd.f32 %v563_v26, %v446_v27  ;;  %v614_v29 = vpop.f32.mrb[1].mxu1 }
 0x1c8   : > { %v450_v30 = vadd.f32 %v447_v28, %v274_v16 }
 0x1ca   : > { %v451_v31 = vsel %vm286_vm1, %v450_v30, 0.0 }
 0x1cb   : > { %452 = vadd.xlane.f32.xlu0 %v451_v31 }
 0x258   : > { %v453_v32 = vpop.xlane.xlu0 %452 }
 0x259   : > { %v455_v33 = vmul.f32 0.03125, %v453_v32 }
 0x25b   : > { %v456_v34 = vsub.f32 %v450_v30, %v455_v33 }
 0x25d   : > { %v457_v35 = vmul.f32 %v456_v34, %v456_v34 }
 0x25f   : > { %v458_v36 = vsel %vm286_vm1, %v457_v35, 0.0 }
 0x260   : > { %459 = vadd.xlane.f32.xlu0 %v458_v36 }
 0x2ed   : > { %v460_v37 = vpop.xlane.xlu0 %459 }
 0x2ee   : > { %v461_v38 = vmul.f32 0.03125, %v460_v37 }
 0x2f0   : > { %v462_v39 = vadd.f32 1e-05, %v461_v38 }
 0x2f2   : > { %675 = vrsqrt.f32 %v462_v39 }
 0x2fc   : > { %v676_v40 = vpop.eup %675 }
 0x2fd   : > { %v464_v42 = vmul.f32 %v676_v40, %v456_v34 }
 0x2ff   : > { %v472_v44 = vmul.f32 %v565_v41, %v464_v42 }
 0x301   : > { %v480_v45 = vadd.f32 %v566_v43, %v472_v44 }
 0x303   : > { %481 = vst.msk [vmem:[%s269_s8] sm:$0xff] %vm286_vm1, %v480_v45 }
 0x304   : > { %690 = shalt.err (!%p687_p3)
}
 0x305   : > { %s691_s18 = scalar_lea.hbm %s894_s15, 128  ;;  %s695_s23 = scalar_lea.hbm %s944_s7, 256 }
 0x306   : > { %p692_p4 = scmp.ne.s32.totalorder %s894_s15, %s691_s18  ;;  %p696_p9 = scmp.lt.u32.totalorder %s894_s15, %s944_s7 }
 0x307   : > { %p697_p10 = scmp.lt.u32.totalorder %s695_s23, %s691_s18  ;;  %p699_p12 = scmp.lt.u32.totalorder %s691_s18, %s894_s15 }
 0x308   : > { %p693_p7 = pnand %p692_p4, %p823_p5 }
 0x309   : > { %p698_p11 = por %p697_p10, %p696_p9 }
 0x30a   : > { %p694_p8 = pneg %p693_p7 }
 0x30b   : > { %p700_p13 = por %p699_p12, %p698_p11 }
 0x30d   : > { %p701_p0 = pnand %p700_p13, %p694_p8 }
 0x30f   : > { %704 = shalt.err (!%p701_p0)
}
 0x310   : > { %633 = dma.vmem_to_hbm [thread:$0]  (%p823_p5), %s896_s9, 128, %s894_s15, %s483_s16  }
 0x311 PF: > { %p639_p1 = scmp.ge.s32.totalorder %s739_s27, 2  ;;  %s508_s13 = sand.u32 1, %s727_s24  }
 0x312   : > { %s509_s14 = scalar_lea.sflag [#allocation3], %s508_s13 }
 0x313   : > { %p636_p2 = pnand %p639_p1, %p827_p6 }
 0x315   : > { %722 = dma.done.wait (!%p636_p2), %s509_s14, 128  }
 0x316   : > { %724 = vsyncadd (!%p636_p2), %s509_s14, 4294967168  ;;  %p17_p3 = scmp.ge.s32.totalorder %s810_s30, 4   ;;  %s947_s24 = smov %s731_s25 }
 0x317   : > { %s948_s25 = smov %s735_s26  ;;  %s949_s26 = smov %s821_s10 }
 0x318   : > { %s950_s27 = smov %s810_s30  ;;  %19 = sbr.rel (!%p17_p3) target bundleno = 3 (0x3), region = 83 }
 0x31f   :  { %514 = vsyncpa [#allocation3], 1 }
 0x320   :  { %516 = vsyncpa [#allocation3 + $0x1], 1 }

</bundles_post_ra>
